<compile_context>
chip_gen: v5e
topology: v5e:2x2
jax: 0.10.0
libtpu: 0.0.40
codegen_flags: <defaults>
</compile_context>

<pallas_src>
import functools

import jax
import jax.numpy as jnp
from jax.experimental import pallas as pl
from jax.experimental.pallas import tpu as pltpu

EPS = 1e-5  # PyTorch BatchNorm2d default


def _residual_block_kernel(x_ref, masks_ref, wm_ref, bnp_ref,
                           out_ref, patch_ref, *, w):
    """All operands live in VMEM.

    x_ref:     (CP, P)       padded input, P = N*H*W (lane-dense), CP = 8
    masks_ref: (9*CP, P)     pre-broadcast boundary masks (tap k -> rows [8k,8k+8))
    wm_ref:    (2*CP, 9*CP)  conv1 / conv2 im2col weights stacked on sublanes
    bnp_ref:   (4*CP, 1)     [gamma1; beta1; gamma2; beta2] stacked on sublanes
    out_ref:   (CP, P)
    patch_ref: (9*CP, P)     im2col scratch
    """
    CP, P = x_ref.shape
    x = x_ref[...]

    wm1 = wm_ref[0 * CP:1 * CP, :]
    wm2 = wm_ref[1 * CP:2 * CP, :]
    g1 = bnp_ref[0 * CP:1 * CP, :]
    be1 = bnp_ref[1 * CP:2 * CP, :]
    g2 = bnp_ref[2 * CP:3 * CP, :]
    be2 = bnp_ref[3 * CP:4 * CP, :]

    taps = [(dy, dx) for dy in (-1, 0, 1) for dx in (-1, 0, 1)]

    def conv3x3(v, wmat):
        # im2col: row-block k holds the (dy, dx)-shifted, boundary-masked copy
        # of v, i.e. shifted[:, p] == v[:, p + dy*W + dx] (wrapped entries are
        # masked to 0).  All stores are 8-sublane aligned -> whole-vreg.
        for k, (dy, dx) in enumerate(taps):
            d = dy * w + dx
            shifted = v if d == 0 else pltpu.roll(v, (-d) % P, 1)
            patch_ref[k * CP:(k + 1) * CP, :] = (
                shifted * masks_ref[k * CP:(k + 1) * CP, :])
        # One MXU matmul per conv: (CP, 9*CP) @ (9*CP, P) -> (CP, P).
        return jnp.dot(wmat, patch_ref[...],
                       preferred_element_type=jnp.float32)

    def batchnorm(v, g, be):
        # Training-mode BN (biased variance), fused to a single FMA.
        # Fuse the two reductions into one cross-lane reduce (XLU relief).
        inv_n = 1.0 / P
        stacked = jnp.concatenate([v, v * v], axis=0)            # (2*CP, P)
        sums = jnp.sum(stacked, axis=1, keepdims=True) * inv_n   # (2*CP, 1)
        mean = sums[0:CP, :]
        ex2 = sums[CP:2 * CP, :]
        var = jnp.maximum(ex2 - mean * mean, 0.0)                # clamp rounding
        scale = g * jax.lax.rsqrt(var + EPS)                     # EUP
        shift = be - mean * scale
        return v * scale + shift

    y = conv3x3(x, wm1)
    y = batchnorm(y, g1, be1)
    y = jnp.maximum(y, 0.0)              # ReLU
    y = conv3x3(y, wm2)
    y = batchnorm(y, g2, be2)
    out_ref[...] = x + y                 # residual add (whole-vreg store)


def residual_block(x, w1, b1, g1, be1, w2, b2, g2, be2):
    """Forward of ResidualBlock.  x: (N, C, H, W) float32 (NCHW, as in PyTorch).

    w*: (C, C, 3, 3) OIHW conv weights, b*: (C,) conv biases,
    g*/be*: (C,) BatchNorm weight/bias.  Returns (N, C, H, W) float32.
    """
    del b1, b2  # Conv bias is a per-channel constant: it cancels exactly under
                # training-mode BatchNorm, so it never reaches the kernel.
    N, C, H, W = x.shape
    P = N * H * W
    CP = max(8, -(-C // 8) * 8)          # channel dim padded to 8 sublanes

    f32 = jnp.float32

    # ---- layout plumbing (pure XLA, outside the kernel) ----
    # Padded, channel-major flattened input: x2[c, p], p = n*H*W + h*W + w.
    x2 = jnp.transpose(x, (1, 0, 2, 3)).reshape(C, P)
    x2p = jnp.zeros((CP, P), f32).at[:C, :].set(x2)

    # Padded im2col weights, column order (ky, kx, ci_pad); dead rows/cols = 0.
    def pack_w(wk):
        wp = jnp.zeros((CP, CP, 3, 3), f32).at[:C, :C].set(wk)
        return jnp.transpose(wp, (0, 2, 3, 1)).reshape(CP, 9 * CP)
    wm = jnp.concatenate([pack_w(w1), pack_w(w2)], axis=0)       # (2*CP, 9*CP)

    # Packed BN params; dead channels get gamma=beta=0 so they stay exactly 0.
    def pad_c(v):
        return jnp.zeros((CP,), f32).at[:C].set(v)
    bnp = jnp.concatenate([pad_c(g1), pad_c(be1),
                           pad_c(g2), pad_c(be2)]).reshape(4 * CP, 1)

    # Boundary masks, pre-broadcast to (9*CP, P): tap k occupies rows [CP*k, CP*(k+1)).
    p = jnp.arange(P, dtype=jnp.int32)
    hh = (p // W) % H
    ww = p % W
    rows = []
    for dy in (-1, 0, 1):
        for dx in (-1, 0, 1):
            rows.append((hh + dy >= 0) & (hh + dy < H) &
                        (ww + dx >= 0) & (ww + dx < W))
    masks = jnp.repeat(jnp.stack(rows, axis=0).astype(f32), CP, axis=0)  # (9*CP, P)

    vm = pl.BlockSpec(memory_space=pltpu.MemorySpace.VMEM)
    out2 = pl.pallas_call(
        functools.partial(_residual_block_kernel, w=W),
        out_shape=jax.ShapeDtypeStruct((CP, P), jnp.float32),
        in_specs=[vm] * 4,
        out_specs=vm,
        scratch_shapes=[pltpu.VMEM((9 * CP, P), jnp.float32)],
    )(x2p, masks, wm, bnp)

    return jnp.transpose(out2[:C, :].reshape(C, N, H, W), (1, 0, 2, 3))


def _reference(x, w1, b1, g1, be1, w2, b2, g2, be2):
    """Pure-JAX NCHW reference mirroring the PyTorch module (training-mode BN)."""
    def conv(v, w, b):
        y = jax.lax.conv_general_dilated(
            v, w, window_strides=(1, 1), padding="SAME",
            dimension_numbers=("NCHW", "OIHW", "NCHW"))
        return y + b.reshape(1, -1, 1, 1)

    def bn(v, g, be):
        mean = jnp.mean(v, axis=(0, 2, 3), keepdims=True)
        var = jnp.mean((v - mean) ** 2, axis=(0, 2, 3), keepdims=True)
        return (v - mean) * jax.lax.rsqrt(var + EPS) * g.reshape(1, -1, 1, 1) \
            + be.reshape(1, -1, 1, 1)

    y = jnp.maximum(bn(conv(x, w1, b1), g1, be1), 0.0)
    y = bn(conv(y, w2, b2), g2, be2)
    return x + y


if __name__ == "__main__":
    N, C, H, W = 2, 4, 16, 16           # NCHW, matching ResidualBlock(4)

    key = jax.random.PRNGKey(0)
    ks = jax.random.split(key, 9)
    x = jax.random.normal(ks[0], (N, C, H, W), jnp.float32)
    w1 = jax.random.normal(ks[1], (C, C, 3, 3), jnp.float32) * 0.1
    b1 = jax.random.normal(ks[2], (C,), jnp.float32) * 0.1
    g1 = 1.0 + 0.1 * jax.random.normal(ks[3], (C,), jnp.float32)
    be1 = 0.1 * jax.random.normal(ks[4], (C,), jnp.float32)
    w2 = jax.random.normal(ks[5], (C, C, 3, 3), jnp.float32) * 0.1
    b2 = jax.random.normal(ks[6], (C,), jnp.float32) * 0.1
    g2 = 1.0 + 0.1 * jax.random.normal(ks[7], (C,), jnp.float32)
    be2 = 0.1 * jax.random.normal(ks[8], (C,), jnp.float32)

    out = residual_block(x, w1, b1, g1, be1, w2, b2, g2, be2)
    out = jax.block_until_ready(out)

    ref = _reference(x, w1, b1, g1, be1, w2, b2, g2, be2)
    assert out.shape == (N, C, H, W) and out.dtype == jnp.float32
    err = float(jnp.max(jnp.abs(out - ref)))
    assert jnp.allclose(out, ref, atol=2e-4, rtol=2e-4), err

    print("KERNEL_OK")
</pallas_src>

<mosaic_0001>
module attributes {stable_mosaic.version = 11 : i64} {
  func.func @_residual_block_kernel(%arg0: memref<8x512xf32, #tpu.memory_space<vmem>>, %arg1: memref<72x512xf32, #tpu.memory_space<vmem>>, %arg2: memref<16x72xf32, #tpu.memory_space<vmem>>, %arg3: memref<32x1xf32, #tpu.memory_space<vmem>>, %arg4: memref<8x512xf32, #tpu.memory_space<vmem>>, %arg5: memref<72x512xf32, #tpu.memory_space<vmem>>) attributes {dimension_semantics = [], scalar_prefetch = 0 : i64, scratch_operands = 1 : i64, tpu.core_type = #tpu.core_type<tc>} {
    %c0 = arith.constant 0 : index
    %c0_0 = arith.constant 0 : index
    %0 = vector.load %arg0[%c0, %c0_0] : memref<8x512xf32, #tpu.memory_space<vmem>>, vector<8x512xf32>
    %c0_1 = arith.constant 0 : index
    %c0_2 = arith.constant 0 : index
    %1 = vector.load %arg2[%c0_1, %c0_2] : memref<16x72xf32, #tpu.memory_space<vmem>>, vector<8x72xf32>
    %c8 = arith.constant 8 : index
    %c0_3 = arith.constant 0 : index
    %2 = vector.load %arg2[%c8, %c0_3] : memref<16x72xf32, #tpu.memory_space<vmem>>, vector<8x72xf32>
    %c0_4 = arith.constant 0 : index
    %c0_5 = arith.constant 0 : index
    %3 = vector.load %arg3[%c0_4, %c0_5] : memref<32x1xf32, #tpu.memory_space<vmem>>, vector<8x1xf32>
    %c8_6 = arith.constant 8 : index
    %c0_7 = arith.constant 0 : index
    %4 = vector.load %arg3[%c8_6, %c0_7] : memref<32x1xf32, #tpu.memory_space<vmem>>, vector<8x1xf32>
    %c16 = arith.constant 16 : index
    %c0_8 = arith.constant 0 : index
    %5 = vector.load %arg3[%c16, %c0_8] : memref<32x1xf32, #tpu.memory_space<vmem>>, vector<8x1xf32>
    %c24 = arith.constant 24 : index
    %c0_9 = arith.constant 0 : index
    %6 = vector.load %arg3[%c24, %c0_9] : memref<32x1xf32, #tpu.memory_space<vmem>>, vector<8x1xf32>
    %c17_i32 = arith.constant 17 : i32
    %7 = tpu.dynamic_rotate %0 by %c17_i32 dim 1 : vector<8x512xf32>, i32 -> vector<8x512xf32>
    %c0_10 = arith.constant 0 : index
    %c0_11 = arith.constant 0 : index
    %8 = vector.load %arg1[%c0_10, %c0_11] : memref<72x512xf32, #tpu.memory_space<vmem>>, vector<8x512xf32>
    %9 = arith.mulf %7, %8 : vector<8x512xf32>
    %c0_12 = arith.constant 0 : index
    %c0_13 = arith.constant 0 : index
    %10 = vector.load %arg5[%c0_12, %c0_13] : memref<72x512xf32, #tpu.memory_space<vmem>>, vector<8x512xf32>
    tpu.vector_store %arg5[%c0_12, %c0_13], %9 {strides = array<i32>} : memref<72x512xf32, #tpu.memory_space<vmem>>, vector<8x512xf32>,
    %c16_i32 = arith.constant 16 : i32
    %11 = tpu.dynamic_rotate %0 by %c16_i32 dim 1 : vector<8x512xf32>, i32 -> vector<8x512xf32>
    %c8_14 = arith.constant 8 : index
    %c0_15 = arith.constant 0 : index
    %12 = vector.load %arg1[%c8_14, %c0_15] : memref<72x512xf32, #tpu.memory_space<vmem>>, vector<8x512xf32>
    %13 = arith.mulf %11, %12 : vector<8x512xf32>
    %c8_16 = arith.constant 8 : index
    %c0_17 = arith.constant 0 : index
    %14 = vector.load %arg5[%c8_16, %c0_17] : memref<72x512xf32, #tpu.memory_space<vmem>>, vector<8x512xf32>
    tpu.vector_store %arg5[%c8_16, %c0_17], %13 {strides = array<i32>} : memref<72x512xf32, #tpu.memory_space<vmem>>, vector<8x512xf32>,
    %c15_i32 = arith.constant 15 : i32
    %15 = tpu.dynamic_rotate %0 by %c15_i32 dim 1 : vector<8x512xf32>, i32 -> vector<8x512xf32>
    %c16_18 = arith.constant 16 : index
    %c0_19 = arith.constant 0 : index
    %16 = vector.load %arg1[%c16_18, %c0_19] : memref<72x512xf32, #tpu.memory_space<vmem>>, vector<8x512xf32>
    %17 = arith.mulf %15, %16 : vector<8x512xf32>
    %c16_20 = arith.constant 16 : index
    %c0_21 = arith.constant 0 : index
    %18 = vector.load %arg5[%c16_20, %c0_21] : memref<72x512xf32, #tpu.memory_space<vmem>>, vector<8x512xf32>
    tpu.vector_store %arg5[%c16_20, %c0_21], %17 {strides = array<i32>} : memref<72x512xf32, #tpu.memory_space<vmem>>, vector<8x512xf32>,
    %c1_i32 = arith.constant 1 : i32
    %19 = tpu.dynamic_rotate %0 by %c1_i32 dim 1 : vector<8x512xf32>, i32 -> vector<8x512xf32>
    %c24_22 = arith.constant 24 : index
    %c0_23 = arith.constant 0 : index
    %20 = vector.load %arg1[%c24_22, %c0_23] : memref<72x512xf32, #tpu.memory_space<vmem>>, vector<8x512xf32>
    %21 = arith.mulf %19, %20 : vector<8x512xf32>
    %c24_24 = arith.constant 24 : index
    %c0_25 = arith.constant 0 : index
    %22 = vector.load %arg5[%c24_24, %c0_25] : memref<72x512xf32, #tpu.memory_space<vmem>>, vector<8x512xf32>
    tpu.vector_store %arg5[%c24_24, %c0_25], %21 {strides = array<i32>} : memref<72x512xf32, #tpu.memory_space<vmem>>, vector<8x512xf32>,
    %c32 = arith.constant 32 : index
    %c0_26 = arith.constant 0 : index
    %23 = vector.load %arg1[%c32, %c0_26] : memref<72x512xf32, #tpu.memory_space<vmem>>, vector<8x512xf32>
    %24 = arith.mulf %0, %23 : vector<8x512xf32>
    %c32_27 = arith.constant 32 : index
    %c0_28 = arith.constant 0 : index
    %25 = vector.load %arg5[%c32_27, %c0_28] : memref<72x512xf32, #tpu.memory_space<vmem>>, vector<8x512xf32>
    tpu.vector_store %arg5[%c32_27, %c0_28], %24 {strides = array<i32>} : memref<72x512xf32, #tpu.memory_space<vmem>>, vector<8x512xf32>,
    %c511_i32 = arith.constant 511 : i32
    %26 = tpu.dynamic_rotate %0 by %c511_i32 dim 1 : vector<8x512xf32>, i32 -> vector<8x512xf32>
    %c40 = arith.constant 40 : index
    %c0_29 = arith.constant 0 : index
    %27 = vector.load %arg1[%c40, %c0_29] : memref<72x512xf32, #tpu.memory_space<vmem>>, vector<8x512xf32>
    %28 = arith.mulf %26, %27 : vector<8x512xf32>
    %c40_30 = arith.constant 40 : index
    %c0_31 = arith.constant 0 : index
    %29 = vector.load %arg5[%c40_30, %c0_31] : memref<72x512xf32, #tpu.memory_space<vmem>>, vector<8x512xf32>
    tpu.vector_store %arg5[%c40_30, %c0_31], %28 {strides = array<i32>} : memref<72x512xf32, #tpu.memory_space<vmem>>, vector<8x512xf32>,
    %c497_i32 = arith.constant 497 : i32
    %30 = tpu.dynamic_rotate %0 by %c497_i32 dim 1 : vector<8x512xf32>, i32 -> vector<8x512xf32>
    %c48 = arith.constant 48 : index
    %c0_32 = arith.constant 0 : index
    %31 = vector.load %arg1[%c48, %c0_32] : memref<72x512xf32, #tpu.memory_space<vmem>>, vector<8x512xf32>
    %32 = arith.mulf %30, %31 : vector<8x512xf32>
    %c48_33 = arith.constant 48 : index
    %c0_34 = arith.constant 0 : index
    %33 = vector.load %arg5[%c48_33, %c0_34] : memref<72x512xf32, #tpu.memory_space<vmem>>, vector<8x512xf32>
    tpu.vector_store %arg5[%c48_33, %c0_34], %32 {strides = array<i32>} : memref<72x512xf32, #tpu.memory_space<vmem>>, vector<8x512xf32>,
    %c496_i32 = arith.constant 496 : i32
    %34 = tpu.dynamic_rotate %0 by %c496_i32 dim 1 : vector<8x512xf32>, i32 -> vector<8x512xf32>
    %c56 = arith.constant 56 : index
    %c0_35 = arith.constant 0 : index
    %35 = vector.load %arg1[%c56, %c0_35] : memref<72x512xf32, #tpu.memory_space<vmem>>, vector<8x512xf32>
    %36 = arith.mulf %34, %35 : vector<8x512xf32>
    %c56_36 = arith.constant 56 : index
    %c0_37 = arith.constant 0 : index
    %37 = vector.load %arg5[%c56_36, %c0_37] : memref<72x512xf32, #tpu.memory_space<vmem>>, vector<8x512xf32>
    tpu.vector_store %arg5[%c56_36, %c0_37], %36 {strides = array<i32>} : memref<72x512xf32, #tpu.memory_space<vmem>>, vector<8x512xf32>,
    %c495_i32 = arith.constant 495 : i32
    %38 = tpu.dynamic_rotate %0 by %c495_i32 dim 1 : vector<8x512xf32>, i32 -> vector<8x512xf32>
    %c64 = arith.constant 64 : index
    %c0_38 = arith.constant 0 : index
    %39 = vector.load %arg1[%c64, %c0_38] : memref<72x512xf32, #tpu.memory_space<vmem>>, vector<8x512xf32>
    %40 = arith.mulf %38, %39 : vector<8x512xf32>
    %c64_39 = arith.constant 64 : index
    %c0_40 = arith.constant 0 : index
    %41 = vector.load %arg5[%c64_39, %c0_40] : memref<72x512xf32, #tpu.memory_space<vmem>>, vector<8x512xf32>
    tpu.vector_store %arg5[%c64_39, %c0_40], %40 {strides = array<i32>} : memref<72x512xf32, #tpu.memory_space<vmem>>, vector<8x512xf32>,
    %c0_41 = arith.constant 0 : index
    %c0_42 = arith.constant 0 : index
    %42 = vector.load %arg5[%c0_41, %c0_42] : memref<72x512xf32, #tpu.memory_space<vmem>>, vector<72x512xf32>
    %cst = arith.constant dense<0.000000e+00> : vector<8x512xf32>
    %43 = tpu.matmul %1, %42, %cst {dimension_numbers = #tpu.dot_dimension_numbers<[1], [0], [0], [1], [0, 0, 1, 1], [], []>} : vector<8x72xf32>, vector<72x512xf32>, vector<8x512xf32> -> vector<8x512xf32>
    %44 = arith.mulf %43, %43 : vector<8x512xf32>
    %45 = tpu.concatenate %43, %44 in 0 : vector<8x512xf32>, vector<8x512xf32> -> vector<16x512xf32>
    %cst_43 = arith.constant dense<0.000000e+00> : vector<16xf32>
    %46 = vector.multi_reduction <add>, %45, %cst_43 [1] : vector<16x512xf32> to vector<16xf32>
    %47 = vector.shape_cast %46 : vector<16xf32> to vector<16x1xf32>
    %cst_44 = arith.constant 0.001953125 : f32
    %48 = vector.broadcast %cst_44 : f32 to vector<16x1xf32>
    %49 = arith.mulf %47, %48 : vector<16x1xf32>
    %50 = vector.extract_strided_slice %49 {offsets = [0, 0], sizes = [8, 1], strides = [1, 1]} : vector<16x1xf32> to vector<8x1xf32>
    %51 = vector.extract_strided_slice %49 {offsets = [8, 0], sizes = [8, 1], strides = [1, 1]} : vector<16x1xf32> to vector<8x1xf32>
    %52 = arith.mulf %50, %50 : vector<8x1xf32>
    %53 = arith.subf %51, %52 : vector<8x1xf32>
    %cst_45 = arith.constant 0.000000e+00 : f32
    %54 = vector.broadcast %cst_45 : f32 to vector<8x1xf32>
    %55 = arith.maximumf %53, %54 : vector<8x1xf32>
    %cst_46 = arith.constant 9.99999974E-6 : f32
    %56 = vector.broadcast %cst_46 : f32 to vector<8x1xf32>
    %57 = arith.addf %55, %56 : vector<8x1xf32>
    %58 = math.rsqrt %57 : vector<8x1xf32>
    %59 = arith.mulf %3, %58 : vector<8x1xf32>
    %60 = arith.mulf %50, %59 : vector<8x1xf32>
    %61 = arith.subf %4, %60 : vector<8x1xf32>
    %62 = vector.broadcast %59 : vector<8x1xf32> to vector<8x512xf32>
    %63 = arith.mulf %43, %62 : vector<8x512xf32>
    %64 = vector.broadcast %61 : vector<8x1xf32> to vector<8x512xf32>
    %65 = arith.addf %63, %64 : vector<8x512xf32>
    %cst_47 = arith.constant 0.000000e+00 : f32
    %66 = vector.broadcast %cst_47 : f32 to vector<8x512xf32>
    %67 = arith.maximumf %65, %66 : vector<8x512xf32>
    %c17_i32_48 = arith.constant 17 : i32
    %68 = tpu.dynamic_rotate %67 by %c17_i32_48 dim 1 : vector<8x512xf32>, i32 -> vector<8x512xf32>
    %c0_49 = arith.constant 0 : index
    %c0_50 = arith.constant 0 : index
    %69 = vector.load %arg1[%c0_49, %c0_50] : memref<72x512xf32, #tpu.memory_space<vmem>>, vector<8x512xf32>
    %70 = arith.mulf %68, %69 : vector<8x512xf32>
    %c0_51 = arith.constant 0 : index
    %c0_52 = arith.constant 0 : index
    %71 = vector.load %arg5[%c0_51, %c0_52] : memref<72x512xf32, #tpu.memory_space<vmem>>, vector<8x512xf32>
    tpu.vector_store %arg5[%c0_51, %c0_52], %70 {strides = array<i32>} : memref<72x512xf32, #tpu.memory_space<vmem>>, vector<8x512xf32>,
    %c16_i32_53 = arith.constant 16 : i32
    %72 = tpu.dynamic_rotate %67 by %c16_i32_53 dim 1 : vector<8x512xf32>, i32 -> vector<8x512xf32>
    %c8_54 = arith.constant 8 : index
    %c0_55 = arith.constant 0 : index
    %73 = vector.load %arg1[%c8_54, %c0_55] : memref<72x512xf32, #tpu.memory_space<vmem>>, vector<8x512xf32>
    %74 = arith.mulf %72, %73 : vector<8x512xf32>
    %c8_56 = arith.constant 8 : index
    %c0_57 = arith.constant 0 : index
    %75 = vector.load %arg5[%c8_56, %c0_57] : memref<72x512xf32, #tpu.memory_space<vmem>>, vector<8x512xf32>
    tpu.vector_store %arg5[%c8_56, %c0_57], %74 {strides = array<i32>} : memref<72x512xf32, #tpu.memory_space<vmem>>, vector<8x512xf32>,
    %c15_i32_58 = arith.constant 15 : i32
    %76 = tpu.dynamic_rotate %67 by %c15_i32_58 dim 1 : vector<8x512xf32>, i32 -> vector<8x512xf32>
    %c16_59 = arith.constant 16 : index
    %c0_60 = arith.constant 0 : index
    %77 = vector.load %arg1[%c16_59, %c0_60] : memref<72x512xf32, #tpu.memory_space<vmem>>, vector<8x512xf32>
    %78 = arith.mulf %76, %77 : vector<8x512xf32>
    %c16_61 = arith.constant 16 : index
    %c0_62 = arith.constant 0 : index
    %79 = vector.load %arg5[%c16_61, %c0_62] : memref<72x512xf32, #tpu.memory_space<vmem>>, vector<8x512xf32>
    tpu.vector_store %arg5[%c16_61, %c0_62], %78 {strides = array<i32>} : memref<72x512xf32, #tpu.memory_space<vmem>>, vector<8x512xf32>,
    %c1_i32_63 = arith.constant 1 : i32
    %80 = tpu.dynamic_rotate %67 by %c1_i32_63 dim 1 : vector<8x512xf32>, i32 -> vector<8x512xf32>
    %c24_64 = arith.constant 24 : index
    %c0_65 = arith.constant 0 : index
    %81 = vector.load %arg1[%c24_64, %c0_65] : memref<72x512xf32, #tpu.memory_space<vmem>>, vector<8x512xf32>
    %82 = arith.mulf %80, %81 : vector<8x512xf32>
    %c24_66 = arith.constant 24 : index
    %c0_67 = arith.constant 0 : index
    %83 = vector.load %arg5[%c24_66, %c0_67] : memref<72x512xf32, #tpu.memory_space<vmem>>, vector<8x512xf32>
    tpu.vector_store %arg5[%c24_66, %c0_67], %82 {strides = array<i32>} : memref<72x512xf32, #tpu.memory_space<vmem>>, vector<8x512xf32>,
    %c32_68 = arith.constant 32 : index
    %c0_69 = arith.constant 0 : index
    %84 = vector.load %arg1[%c32_68, %c0_69] : memref<72x512xf32, #tpu.memory_space<vmem>>, vector<8x512xf32>
    %85 = arith.mulf %67, %84 : vector<8x512xf32>
    %c32_70 = arith.constant 32 : index
    %c0_71 = arith.constant 0 : index
    %86 = vector.load %arg5[%c32_70, %c0_71] : memref<72x512xf32, #tpu.memory_space<vmem>>, vector<8x512xf32>
    tpu.vector_store %arg5[%c32_70, %c0_71], %85 {strides = array<i32>} : memref<72x512xf32, #tpu.memory_space<vmem>>, vector<8x512xf32>,
    %c511_i32_72 = arith.constant 511 : i32
    %87 = tpu.dynamic_rotate %67 by %c511_i32_72 dim 1 : vector<8x512xf32>, i32 -> vector<8x512xf32>
    %c40_73 = arith.constant 40 : index
    %c0_74 = arith.constant 0 : index
    %88 = vector.load %arg1[%c40_73, %c0_74] : memref<72x512xf32, #tpu.memory_space<vmem>>, vector<8x512xf32>
    %89 = arith.mulf %87, %88 : vector<8x512xf32>
    %c40_75 = arith.constant 40 : index
    %c0_76 = arith.constant 0 : index
    %90 = vector.load %arg5[%c40_75, %c0_76] : memref<72x512xf32, #tpu.memory_space<vmem>>, vector<8x512xf32>
    tpu.vector_store %arg5[%c40_75, %c0_76], %89 {strides = array<i32>} : memref<72x512xf32, #tpu.memory_space<vmem>>, vector<8x512xf32>,
    %c497_i32_77 = arith.constant 497 : i32
    %91 = tpu.dynamic_rotate %67 by %c497_i32_77 dim 1 : vector<8x512xf32>, i32 -> vector<8x512xf32>
    %c48_78 = arith.constant 48 : index
    %c0_79 = arith.constant 0 : index
    %92 = vector.load %arg1[%c48_78, %c0_79] : memref<72x512xf32, #tpu.memory_space<vmem>>, vector<8x512xf32>
    %93 = arith.mulf %91, %92 : vector<8x512xf32>
    %c48_80 = arith.constant 48 : index
    %c0_81 = arith.constant 0 : index
    %94 = vector.load %arg5[%c48_80, %c0_81] : memref<72x512xf32, #tpu.memory_space<vmem>>, vector<8x512xf32>
    tpu.vector_store %arg5[%c48_80, %c0_81], %93 {strides = array<i32>} : memref<72x512xf32, #tpu.memory_space<vmem>>, vector<8x512xf32>,
    %c496_i32_82 = arith.constant 496 : i32
    %95 = tpu.dynamic_rotate %67 by %c496_i32_82 dim 1 : vector<8x512xf32>, i32 -> vector<8x512xf32>
    %c56_83 = arith.constant 56 : index
    %c0_84 = arith.constant 0 : index
    %96 = vector.load %arg1[%c56_83, %c0_84] : memref<72x512xf32, #tpu.memory_space<vmem>>, vector<8x512xf32>
    %97 = arith.mulf %95, %96 : vector<8x512xf32>
    %c56_85 = arith.constant 56 : index
    %c0_86 = arith.constant 0 : index
    %98 = vector.load %arg5[%c56_85, %c0_86] : memref<72x512xf32, #tpu.memory_space<vmem>>, vector<8x512xf32>
    tpu.vector_store %arg5[%c56_85, %c0_86], %97 {strides = array<i32>} : memref<72x512xf32, #tpu.memory_space<vmem>>, vector<8x512xf32>,
    %c495_i32_87 = arith.constant 495 : i32
    %99 = tpu.dynamic_rotate %67 by %c495_i32_87 dim 1 : vector<8x512xf32>, i32 -> vector<8x512xf32>
    %c64_88 = arith.constant 64 : index
    %c0_89 = arith.constant 0 : index
    %100 = vector.load %arg1[%c64_88, %c0_89] : memref<72x512xf32, #tpu.memory_space<vmem>>, vector<8x512xf32>
    %101 = arith.mulf %99, %100 : vector<8x512xf32>
    %c64_90 = arith.constant 64 : index
    %c0_91 = arith.constant 0 : index
    %102 = vector.load %arg5[%c64_90, %c0_91] : memref<72x512xf32, #tpu.memory_space<vmem>>, vector<8x512xf32>
    tpu.vector_store %arg5[%c64_90, %c0_91], %101 {strides = array<i32>} : memref<72x512xf32, #tpu.memory_space<vmem>>, vector<8x512xf32>,
    %c0_92 = arith.constant 0 : index
    %c0_93 = arith.constant 0 : index
    %103 = vector.load %arg5[%c0_92, %c0_93] : memref<72x512xf32, #tpu.memory_space<vmem>>, vector<72x512xf32>
    %cst_94 = arith.constant dense<0.000000e+00> : vector<8x512xf32>
    %104 = tpu.matmul %2, %103, %cst_94 {dimension_numbers = #tpu.dot_dimension_numbers<[1], [0], [0], [1], [0, 0, 1, 1], [], []>} : vector<8x72xf32>, vector<72x512xf32>, vector<8x512xf32> -> vector<8x512xf32>
    %105 = arith.mulf %104, %104 : vector<8x512xf32>
    %106 = tpu.concatenate %104, %105 in 0 : vector<8x512xf32>, vector<8x512xf32> -> vector<16x512xf32>
    %cst_95 = arith.constant dense<0.000000e+00> : vector<16xf32>
    %107 = vector.multi_reduction <add>, %106, %cst_95 [1] : vector<16x512xf32> to vector<16xf32>
    %108 = vector.shape_cast %107 : vector<16xf32> to vector<16x1xf32>
    %cst_96 = arith.constant 0.001953125 : f32
    %109 = vector.broadcast %cst_96 : f32 to vector<16x1xf32>
    %110 = arith.mulf %108, %109 : vector<16x1xf32>
    %111 = vector.extract_strided_slice %110 {offsets = [0, 0], sizes = [8, 1], strides = [1, 1]} : vector<16x1xf32> to vector<8x1xf32>
    %112 = vector.extract_strided_slice %110 {offsets = [8, 0], sizes = [8, 1], strides = [1, 1]} : vector<16x1xf32> to vector<8x1xf32>
    %113 = arith.mulf %111, %111 : vector<8x1xf32>
    %114 = arith.subf %112, %113 : vector<8x1xf32>
    %cst_97 = arith.constant 0.000000e+00 : f32
    %115 = vector.broadcast %cst_97 : f32 to vector<8x1xf32>
    %116 = arith.maximumf %114, %115 : vector<8x1xf32>
    %cst_98 = arith.constant 9.99999974E-6 : f32
    %117 = vector.broadcast %cst_98 : f32 to vector<8x1xf32>
    %118 = arith.addf %116, %117 : vector<8x1xf32>
    %119 = math.rsqrt %118 : vector<8x1xf32>
    %120 = arith.mulf %5, %119 : vector<8x1xf32>
    %121 = arith.mulf %111, %120 : vector<8x1xf32>
    %122 = arith.subf %6, %121 : vector<8x1xf32>
    %123 = vector.broadcast %120 : vector<8x1xf32> to vector<8x512xf32>
    %124 = arith.mulf %104, %123 : vector<8x512xf32>
    %125 = vector.broadcast %122 : vector<8x1xf32> to vector<8x512xf32>
    %126 = arith.addf %124, %125 : vector<8x512xf32>
    %127 = arith.addf %0, %126 : vector<8x512xf32>
    %c0_99 = arith.constant 0 : index
    %c0_100 = arith.constant 0 : index
    %128 = vector.load %arg4[%c0_99, %c0_100] : memref<8x512xf32, #tpu.memory_space<vmem>>, vector<8x512xf32>
    tpu.vector_store %arg4[%c0_99, %c0_100], %127 {strides = array<i32>} : memref<8x512xf32, #tpu.memory_space<vmem>>, vector<8x512xf32>,
    return
  }
}

</mosaic_0001>

<bundles_post_ra>
// kernel: tpu_custom_call.1
= control target key start
LH: loop header
LB: loop body
LE: loop exit
PB: predicated region body
PF: predicated region fallthrough
CT: control target
= control target key end

     0   :  { %9 = vsyncpa [#allocation4], 0  ;;  %s1494_s0 = inlined_call_operand.vmem [shape: f32[8,512], index: 0, kind: input, shape index: {}]   ;;  %s1495_s1 = inlined_call_operand.hbm [shape: f32[72,512], index: 1, kind: input, shape index: {}]   ;;  %s1496_s2 = inlined_call_operand.hbm [shape: f32[16,72], index: 2, kind: input, shape index: {}]   ;;  %s1497_s3 = inlined_call_operand.vmem [shape: f32[32,1], index: 3, kind: input, shape index: {}]   ;;  %s1498_s4 = inlined_call_operand.hbm [shape: f32[8,512], index: 4, kind: output, shape index: {}]  }
   0x1   :  { %10 = vsyncpa [#allocation7], 0 }
   0x2   :  { %11 = vsyncpa [#allocation5], 0  ;;  %s18_s17 = sshll.u32 %s1495_s1, 4  ;;  %s960_s18 = smov [#allocation3]   ;;  %s19_s17 = int_to_ptr.hbm [resolvable:$true] %s18_s17 }
   0x3   :  { %s20_s19 = sshll.u32 %s960_s18, 4  ;;  %s31_s22 = sshll.u32 %s1496_s2, 4  ;;  %s21_s19 = int_to_ptr.vmem [resolvable:$true] %s20_s19  ;;  %s32_s22 = int_to_ptr.hbm [resolvable:$true] %s31_s22 }
   0x4   :  { %s961_s23 = smov 512   ;;  %s962_s24 = smov 32  }
   0x5   :  { %26 = dma.hbm_to_vmem [thread:$0]  %s19_s17, 4608, %s21_s19, [#allocation4], %s961_s23, %s961_s23, %s962_s24  }
   0x6   :  { %s963_s25 = smov [#allocation6]   ;;  %s964_s27 = smov 128  }
   0x7   :  { %s33_s26 = sshll.u32 %s963_s25, 4  ;;  %s965_s28 = smov 8   ;;  %s34_s26 = int_to_ptr.vmem [resolvable:$true] %s33_s26 }
   0x8   :  { %39 = dma.hbm_to_vmem [thread:$0]  %s32_s22, 256, %s34_s26, [#allocation7], %s964_s27, %s964_s27, %s965_s28  }
   0x9   :  { %954 = dma.done.wait [#allocation4], 4608  }
   0xa   :  { %955 = vsyncadd [#allocation4], 4294962688 }
   0xb   :  { %956 = dma.done.wait [#allocation7], 256  }
   0xc   :  { %957 = vsyncadd [#allocation7], 4294967040  ;;  %v1010_v0 = vld [vmem:[%s1494_s0 + $0x10] sm:$0xff]  ;;  %v1015_v1 = vld [vmem:[%s1494_s0] sm:$0xff]  ;;  %s966_s5 = smov 112   ;;  %s967_s6 = smov 111   ;;  %v68_v6 = vlaneseq }
   0xd   :  { %228 = vrot.lane.b32.xlu1 %v1010_v0, %s966_s5  ;;  %253 = vrot.lane.b32.xlu0 %v1010_v0, %s967_s6  ;;  %v1026_v2 = vld [vmem:[%s1494_s0 + $0x18] sm:$0xff]  ;;  %s968_s9 = smov 113   ;;  %v1037_v3 = vld [vmem:[%s1494_s0 + $0x8] sm:$0xff]  ;;  %s969_s12 = smov 127   ;;  %v1093_v8 = vld [vmem:[#allocation3 + $0x100] sm:$0xff]  ;;  %vm310_vm8 = vcmask 588800  }
   0xe   :  { %249 = vrot.lane.b32.xlu2 %v1015_v1, %s967_s6  ;;  %s970_s13 = smov 1   ;;  %s971_s14 = smov 15   ;;  %v1091_v7 = vand.u32 127, %v68_v6  ;;  %v1099_v12 = vld [vmem:[#allocation3 + $0x108] sm:$0xff]  ;;  %v1105_v18 = vld [vmem:[#allocation3 + $0x110] sm:$0xff]  ;;  %v1107_v19 = vld [vmem:[#allocation3 + $0x118] sm:$0xff] }
   0xf   :  { %s972_s15 = smov 16   ;;  %s973_s16 = smov 17   ;;  %v1115_v25 = vld [vmem:[#allocation3 + $0xf0] sm:$0xff]  ;;  %v1123_v30 = vld [vmem:[#allocation3 + $0xf8] sm:$0xff]  ;;  %v1146_v49 = vld [vmem:[#allocation3 + $0xe0] sm:$0xff] }
  0x10   :  { %vm257_vm0 = vcmp.lt.s32.totalorder %v1091_v7, 111  ;;  %vm232_vm1 = vcmp.lt.s32.totalorder %v1091_v7, 112  ;;  %vm207_vm2 = vcmp.lt.s32.totalorder %v1091_v7, 113  ;;  %v1121_v29 = vld [vmem:[#allocation3 + $0xd0] sm:$0xff]  ;;  %v1131_v36 = vld [vmem:[#allocation3 + $0xd8] sm:$0xff]  ;;  %vm182_vm3 = vcmp.lt.s32.totalorder %v1091_v7, 127 }
  0x11   :  { %v1137_v41 = vld [vmem:[#allocation3 + $0xb0] sm:$0xff]  ;;  %v1148_v50 = vld [vmem:[#allocation3 + $0xe8] sm:$0xff]  ;;  %v1150_v51 = vld [vmem:[#allocation3 + $0xb8] sm:$0xff]  ;;  %vm145_vm4 = vcmp.lt.s32.totalorder %v1091_v7, 1  ;;  %vm120_vm5 = vcmp.lt.s32.totalorder %v1091_v7, 15  ;;  %vm95_vm6 = vcmp.lt.s32.totalorder %v1091_v7, 16 }
  0x12   :  { %v1139_v42 = vld [vmem:[#allocation3 + $0x90] sm:$0xff]  ;;  %v1154_v55 = vld [vmem:[#allocation3 + $0x98] sm:$0xff]  ;;  %v1164_v60 = vld [vmem:[#allocation3 + $0xc0] sm:$0xff]  ;;  %vm70_vm7 = vcmp.lt.s32.totalorder %v1091_v7, 17  ;;  %s975_s28 = smov [#allocation8]   ;;  %s838_s30 = sshll.u32 %s1498_s4, 4  ;;  %s839_s30 = int_to_ptr.hbm [resolvable:$true] %s838_s30 }
  0x13   :  { %v168_v47 = vmul.f32 %v1139_v42, %v1010_v0  ;;  %v1166_v61 = vld [vmem:[#allocation3 + $0xc8] sm:$0xff]  ;;  %s836_s1 = sshll.u32 %s975_s28, 4  ;;  %s837_s1 = int_to_ptr.vmem [resolvable:$true] %s836_s1 }
  0x15   :  { %230 = vrot.lane.b32.xlu1 %v1026_v2, %s966_s5  ;;  %255 = vrot.lane.b32.xlu0 %v1026_v2, %s967_s6 }
  0x16   :  { %203 = vrot.lane.b32.xlu2 %v1010_v0, %s968_s9 }
  0x1d   :  { %205 = vrot.lane.b32.xlu0 %v1026_v2, %s968_s9  ;;  %224 = vrot.lane.b32.xlu1 %v1015_v1, %s966_s5 }
  0x1e   :  { %251 = vrot.lane.b32.xlu2 %v1037_v3, %s967_s6 }
  0x25   :  { %178 = vrot.lane.b32.xlu0 %v1010_v0, %s969_s12  ;;  %180 = vrot.lane.b32.xlu1 %v1026_v2, %s969_s12 }
  0x26   :  { %199 = vrot.lane.b32.xlu2 %v1015_v1, %s968_s9 }
  0x2d   :  { %226 = vrot.lane.b32.xlu0 %v1037_v3, %s966_s5  ;;  %174 = vrot.lane.b32.xlu1 %v1015_v1, %s969_s12 }
  0x2e   :  { %201 = vrot.lane.b32.xlu2 %v1037_v3, %s968_s9 }
  0x35   :  { %139 = vrot.lane.b32.xlu0 %v1037_v3, %s970_s13  ;;  %141 = vrot.lane.b32.xlu1 %v1010_v0, %s970_s13 }
  0x36   :  { %176 = vrot.lane.b32.xlu2 %v1037_v3, %s969_s12 }
  0x3d   :  { %114 = vrot.lane.b32.xlu0 %v1037_v3, %s971_s14  ;;  %116 = vrot.lane.b32.xlu1 %v1010_v0, %s971_s14 }
  0x3e   :  { %143 = vrot.lane.b32.xlu2 %v1026_v2, %s970_s13 }
  0x45   :  { %89 = vrot.lane.b32.xlu0 %v1037_v3, %s972_s15  ;;  %91 = vrot.lane.b32.xlu1 %v1010_v0, %s972_s15 }
  0x46   :  { %118 = vrot.lane.b32.xlu2 %v1026_v2, %s971_s14 }
  0x4d   :  { %137 = vrot.lane.b32.xlu0 %v1015_v1, %s970_s13  ;;  %62 = vrot.lane.b32.xlu1 %v1037_v3, %s973_s16 }
  0x4e   :  { %64 = vrot.lane.b32.xlu2 %v1010_v0, %s973_s16 }
  0x55   :  { %93 = vrot.lane.b32.xlu0 %v1026_v2, %s972_s15  ;;  %112 = vrot.lane.b32.xlu1 %v1015_v1, %s971_s14 }
  0x56   :  { %66 = vrot.lane.b32.xlu2 %v1026_v2, %s973_s16 }
  0x5d   :  { %87 = vrot.lane.b32.xlu0 %v1015_v1, %s972_s15  ;;  %60 = vrot.lane.b32.xlu1 %v1015_v1, %s973_s16 }
  0x68   :  { %v250_v4 = vpop.permute.xlu2 %249 }
  0x70   :  { %v204_v5 = vpop.permute.xlu2 %203 }
  0x78   :  { %v252_v9 = vpop.permute.xlu2 %251 }
  0x79   :  { %v260_v10 = vsel %vm257_vm0, %v250_v4, %v252_v9 }
  0x7a   :  { %v266_v11 = vmul.f32 %v1093_v8, %v260_v10  ;;  %v169_v10 = vmul.f32 %v1154_v55, %v1026_v2 }
  0x7c   :  { %321 = vmatpush.msra.mxu0 %v266_v11  ;;  %v1181_v11 = vld [vmem:[#allocation3 + $0x80] sm:$0xff] }
  0x7f   :  { %v229_v13 = vpop.permute.xlu1 %228  ;;  %v254_v14 = vpop.permute.xlu0 %253 }
  0x80   :  { %v259_v15 = vsel %vm257_vm0, %v252_v9, %v254_v14  ;;  %v200_v17 = vpop.permute.xlu2 %199  ;;  %v1177_v9 = vld [vmem:[#allocation3 + $0xa0] sm:$0xff] }
  0x81   :  { %v267_v16 = vmul.f32 %v1099_v12, %v259_v15 }
  0x83   :  { %341 = vmatpush.msra.mxu1 %v267_v16 }
  0x87   :  { %v231_v20 = vpop.permute.xlu1 %230  ;;  %v256_v21 = vpop.permute.xlu0 %255 }
  0x88   :  { %v233_v22 = vsel %vm232_vm1, %v229_v13, %v231_v20  ;;  %v258_v23 = vsel %vm257_vm0, %v254_v14, %v256_v21  ;;  %v261_v24 = vsel %vm257_vm0, %v256_v21, %v250_v4  ;;  %v202_v37 = vpop.permute.xlu2 %201 }
  0x89   :  { %v268_v26 = vmul.f32 %v1105_v18, %v258_v23  ;;  %v269_v27 = vmul.f32 %v1107_v19, %v261_v24  ;;  %v243_v28 = vmul.f32 %v1115_v25, %v233_v22  ;;  %v209_v52 = vsel %vm207_vm2, %v202_v37, %v204_v5  ;;  %v1194_v22 = vld [vmem:[#allocation3 + $0x70] sm:$0xff]  ;;  %v1196_v23 = vld [vmem:[#allocation3 + $0x78] sm:$0xff] }
  0x8a   :  { %v210_v56 = vsel %vm207_vm2, %v200_v17, %v202_v37  ;;  %v217_v15 = vmul.f32 %v1166_v61, %v209_v52 }
  0x8b   :  { %361 = vmatpush.msra.mxu2 %v268_v26  ;;  %381 = vmatpush.msra.mxu3 %v269_v27  ;;  %v216_v14 = vmul.f32 %v1164_v60, %v210_v56  ;;  %v1226_v56 = vld [vmem:[#allocation3 + $0x10] sm:$0xff] }
  0x8d   :  { %362 = vmatpush.msra.mxu2 %v243_v28 }
  0x8f   :  { %v206_v31 = vpop.permute.xlu0 %205  ;;  %v225_v32 = vpop.permute.xlu1 %224 }
  0x90   :  { %v208_v33 = vsel %vm207_vm2, %v204_v5, %v206_v31  ;;  %v211_v34 = vsel %vm207_vm2, %v206_v31, %v200_v17  ;;  %v236_v35 = vsel %vm232_vm1, %v231_v20, %v225_v32  ;;  %v177_v48 = vpop.permute.xlu2 %176  ;;  %v1173_v5 = vld [vmem:[#allocation3 + $0xa8] sm:$0xff]  ;;  %v166_v20 = vmul.f32 %v1181_v11, %v1015_v1 }
  0x91   :  { %v218_v38 = vmul.f32 %v1121_v29, %v208_v33  ;;  %v244_v39 = vmul.f32 %v1123_v30, %v236_v35  ;;  %v219_v40 = vmul.f32 %v1131_v36, %v211_v34  ;;  %v1205_v33 = vld [vmem:[#allocation3 + $0x50] sm:$0xff]  ;;  %v1207_v34 = vld [vmem:[#allocation3 + $0x58] sm:$0xff] }
  0x93   :  { %363 = vmatpush.msra.mxu2 %v218_v38  ;;  %382 = vmatpush.msra.mxu3 %v244_v39 }
  0x95   :  { %383 = vmatpush.msra.mxu3 %v219_v40 }
  0x97   :  { %v179_v43 = vpop.permute.xlu0 %178  ;;  %v181_v44 = vpop.permute.xlu1 %180 }
  0x98   :  { %v183_v45 = vsel %vm182_vm3, %v179_v43, %v181_v44  ;;  %v184_v62 = vsel %vm182_vm3, %v177_v48, %v179_v43  ;;  %v144_v16 = vpop.permute.xlu2 %143 }
  0x99   :  { %v193_v46 = vmul.f32 %v1137_v41, %v183_v45  ;;  %v192_v17 = vmul.f32 %v1173_v5, %v184_v62 }
  0x9b   :  { %364 = vmatpush.msra.mxu2 %v193_v46 }
  0x9d   :  { %365 = vmatpush.msra.mxu2 %v168_v47 }
  0x9f   :  { %v227_v53 = vpop.permute.xlu0 %226  ;;  %v175_v54 = vpop.permute.xlu1 %174 }
  0xa0   :  { %v234_v57 = vsel %vm232_vm1, %v227_v53, %v229_v13  ;;  %v235_v58 = vsel %vm232_vm1, %v225_v32, %v227_v53  ;;  %v186_v59 = vsel %vm182_vm3, %v181_v44, %v175_v54  ;;  %v185_v6 = vsel %vm182_vm3, %v175_v54, %v177_v48  ;;  %v1183_v13 = vld [vmem:[#allocation3 + $0x88] sm:$0xff]  ;;  %v119_v32 = vpop.permute.xlu2 %118  ;;  %v1216_v44 = vld [vmem:[#allocation3 + $0x30] sm:$0xff]  ;;  %v1222_v53 = vld [vmem:[#allocation3 + $0x60] sm:$0xff] }
  0xa1   :  { %v241_v63 = vmul.f32 %v1146_v49, %v235_v58  ;;  %v242_v0 = vmul.f32 %v1148_v50, %v234_v57  ;;  %v194_v4 = vmul.f32 %v1150_v51, %v186_v59  ;;  %v191_v2 = vmul.f32 %v1177_v9, %v185_v6  ;;  %v1224_v54 = vld [vmem:[#allocation3 + $0x68] sm:$0xff] }
  0xa2   :  { %v167_v21 = vmul.f32 %v1183_v13, %v1037_v3 }
  0xa3   :  { %322 = vmatpush.msra.mxu0 %v241_v63  ;;  %342 = vmatpush.msra.mxu1 %v242_v0 }
  0xa4   :  { %384 = vmatpush.msra.mxu3 %v194_v4 }
  0xa5   :  { %323 = vmatpush.msra.mxu0 %v216_v14  ;;  %343 = vmatpush.msra.mxu1 %v217_v15  ;;  %v1238_v15 = vld [vmem:[#allocation3 + $0x40] sm:$0xff] }
  0xa6   :  { %385 = vmatpush.msra.mxu3 %v169_v10  ;;  %v54_v10 = vld [vmem:[#allocation6] sm:$0xff] }
  0xa7   :  { %v140_v24 = vpop.permute.xlu0 %139  ;;  %v142_v26 = vpop.permute.xlu1 %141  ;;  %324 = vmatpush.msra.mxu0 %v191_v2  ;;  %344 = vmatpush.msra.mxu1 %v192_v17  ;;  %v1242_v17 = vld [vmem:[#allocation3 + $0x38] sm:$0xff] }
  0xa8   :  { %v147_v27 = vsel %vm145_vm4, %v140_v24, %v142_v26  ;;  %v146_v28 = vsel %vm145_vm4, %v142_v26, %v144_v16  ;;  %v65_v52 = vpop.permute.xlu2 %64 }
  0xa9   :  { %v156_v1 = vmul.f32 %v1194_v22, %v147_v27  ;;  %v157_v31 = vmul.f32 %v1196_v23, %v146_v28  ;;  %325 = vmatpush.msra.mxu0 %v166_v20  ;;  %345 = vmatpush.msra.mxu1 %v167_v21 }
  0xab   :  { %366 = vmatpush.msra.mxu2 %v156_v1  ;;  %386 = vmatpush.msra.mxu3 %v157_v31 }
  0xaf   :  { %v115_v35 = vpop.permute.xlu0 %114  ;;  %v117_v37 = vpop.permute.xlu1 %116 }
  0xb0   :  { %v122_v38 = vsel %vm120_vm5, %v115_v35, %v117_v37  ;;  %v121_v39 = vsel %vm120_vm5, %v117_v37, %v119_v32  ;;  %v67_v14 = vpop.permute.xlu2 %66  ;;  %v1255_v37 = vld [vmem:[#allocation3 + $0x18] sm:$0xff] }
  0xb1   :  { %v131_v40 = vmul.f32 %v1205_v33, %v122_v38  ;;  %v132_v43 = vmul.f32 %v1207_v34, %v121_v39  ;;  %v71_v27 = vsel %vm70_vm7, %v65_v52, %v67_v14 }
  0xb2   :  { %v82_v38 = vmul.f32 %v1255_v37, %v71_v27 }
  0xb3   :  { %367 = vmatpush.msra.mxu2 %v131_v40  ;;  %387 = vmatpush.msra.mxu3 %v132_v43 }
  0xb7   :  { %v90_v45 = vpop.permute.xlu0 %89  ;;  %v92_v46 = vpop.permute.xlu1 %91 }
  0xb8   :  { %v97_v47 = vsel %vm95_vm6, %v90_v45, %v92_v46 }
  0xb9   :  { %v106_v48 = vmul.f32 %v1216_v44, %v97_v47 }
  0xbb   :  { %368 = vmatpush.msra.mxu2 %v106_v48 }
  0xbf   :  { %v138_v57 = vpop.permute.xlu0 %137  ;;  %v63_v58 = vpop.permute.xlu1 %62 }
  0xc0   :  { %v148_v59 = vsel %vm145_vm4, %v138_v57, %v140_v24  ;;  %v149_v62 = vsel %vm145_vm4, %v144_v16, %v138_v57  ;;  %v72_v63 = vsel %vm70_vm7, %v63_v58, %v65_v52  ;;  %v1240_v16 = vld [vmem:[#allocation3 + $0x48] sm:$0xff]  ;;  %v1271_v52 = vld [vmem:[#allocation3] sm:$0xff] }
  0xc1   :  { %v154_v0 = vmul.f32 %v1222_v53, %v149_v62  ;;  %v155_v4 = vmul.f32 %v1224_v54, %v148_v59  ;;  %v81_v6 = vmul.f32 %v1226_v56, %v72_v63  ;;  %v1273_v57 = vld [vmem:[#allocation3 + $0x8] sm:$0xff] }
  0xc3   :  { %326 = vmatpush.msra.mxu0 %v154_v0  ;;  %346 = vmatpush.msra.mxu1 %v155_v4 }
  0xc4   :  { %369 = vmatpush.msra.mxu2 %v81_v6 }
  0xc5   :  { %851 = vmatmul.msk.f32.vlgmr.msra.gmra.mxu2 %vm310_vm8, %v54_v10 }
  0xc7   :  { %v94_v2 = vpop.permute.xlu0 %93  ;;  %v113_v20 = vpop.permute.xlu1 %112 }
  0xc8   :  { %v96_v21 = vsel %vm95_vm6, %v92_v46, %v94_v2  ;;  %v123_v24 = vsel %vm120_vm5, %v113_v20, %v115_v35  ;;  %v124_v26 = vsel %vm120_vm5, %v119_v32, %v113_v20  ;;  %v1258_v35 = vld [vmem:[#allocation3 + $0x20] sm:$0xff]  ;;  %v1260_v32 = vld [vmem:[#allocation3 + $0x28] sm:$0xff] }
  0xc9   :  { %v129_v28 = vmul.f32 %v1238_v15, %v124_v26  ;;  %v130_v1 = vmul.f32 %v1240_v16, %v123_v24  ;;  %v107_v31 = vmul.f32 %v1242_v17, %v96_v21 }
  0xcb   :  { %327 = vmatpush.msra.mxu0 %v129_v28  ;;  %347 = vmatpush.msra.mxu1 %v130_v1 }
  0xcc   :  { %388 = vmatpush.msra.mxu3 %v107_v31 }
  0xce   :  { %389 = vmatpush.msra.mxu3 %v82_v38  ;;  %v974_v38 = vmov 0  }
  0xcf   :  { %v88_v39 = vpop.permute.xlu0 %87  ;;  %v61_v40 = vpop.permute.xlu1 %60  ;;  %852 = vmatmul.msk.f32.vlgmr.msra.gmra.mxu3 %vm310_vm8, %v54_v10  ;;  %873 = vset.pattern.permute.xlu1 %v974_v38 }
  0xd0   :  { %v98_v43 = vsel %vm95_vm6, %v88_v39, %v90_v45  ;;  %v99_v46 = vsel %vm95_vm6, %v94_v2, %v88_v39  ;;  %v73_v47 = vsel %vm70_vm7, %v61_v40, %v63_v58  ;;  %v74_v48 = vsel %vm70_vm7, %v67_v14, %v61_v40  ;;  %874 = vset.pattern.permute.xlu0 %v974_v38 }
  0xd1   :  { %v104_v59 = vmul.f32 %v1258_v35, %v99_v46  ;;  %v105_v62 = vmul.f32 %v1260_v32, %v98_v43  ;;  %v79_v45 = vmul.f32 %v1271_v52, %v74_v48  ;;  %v80_v63 = vmul.f32 %v1273_v57, %v73_v47 }
  0xd3   :  { %328 = vmatpush.msra.mxu0 %v104_v59  ;;  %348 = vmatpush.msra.mxu1 %v105_v62 }
  0xd5   :  { %329 = vmatpush.msra.mxu0 %v79_v45  ;;  %349 = vmatpush.msra.mxu1 %v80_v63 }
  0xd6   :  { %849 = vmatmul.msk.f32.vlgmr.msra.gmra.mxu0 %vm310_vm8, %v54_v10  ;;  %850 = vmatmul.msk.f32.vlgmr.msra.gmra.mxu1 %vm310_vm8, %v54_v10 }
 0x148   :  { %v371_v58 = vpop.f32.mrf.mxu2 }
 0x149   :  { %v396_v21 = vmul.f32 %v371_v58, %v371_v58 }
 0x152   :  { %v391_v0 = vpop.f32.mrf.mxu3 }
 0x153   :  { %v331_v4 = vpop.f32.mrf.mxu0  ;;  %v351_v6 = vpop.f32.mrf.mxu1  ;;  %v397_v26 = vmul.f32 %v391_v0, %v391_v0 }
 0x154   :  { %v394_v14 = vmul.f32 %v331_v4, %v331_v4  ;;  %v395_v2 = vmul.f32 %v351_v6, %v351_v6  ;;  %v398_v20 = vadd.f32 %v351_v6, %v331_v4 }
 0x156   :  { %v399_v24 = vadd.f32 %v398_v20, %v371_v58  ;;  %v403_v27 = vadd.f32 %v395_v2, %v394_v14  ;;  %v56_v20 = vld [vmem:[%s1497_s3] sm:$0xff] }
 0x158   :  { %v400_v28 = vadd.f32 %v399_v24, %v391_v0  ;;  %v404_v1 = vadd.f32 %v403_v27, %v396_v21 }
 0x15a   :  { %401 = vadd.xlane.f32.xlu2 %v400_v28  ;;  %v405_v31 = vadd.f32 %v404_v1, %v397_v26  ;;  %v57_v28 = vld [vmem:[%s1497_s3 + $0x8] sm:$0xff] }
 0x15c   :  { %406 = vadd.xlane.f32.xlu0 %v405_v31 }
 0x1cd   :  { %v402_v10 = vpop.xlane.xlu2 %401 }
 0x1ce   :  { %v408_v39 = vmul.f32 0.001953125, %v402_v10 }
 0x1cf   :  { %v407_v40 = vpop.xlane.xlu0 %406 }
 0x1d0   :  { %v410_v43 = vmul.f32 %v408_v39, %v408_v39  ;;  %v409_v46 = vmul.f32 0.001953125, %v407_v40 }
 0x1d2   :  { %v411_v47 = vsub.f32 %v409_v46, %v410_v43 }
 0x1d4   :  { %v412_v48 = vmax.f32 %v411_v47, 0.0 }
 0x1d6   :  { %v413_v59 = vadd.f32 1e-05, %v412_v48 }
 0x1d8   :  { %875 = vrsqrt.f32 %v413_v59  ;;  %vm420_vm10 = vweird.f32 %v413_v59 }
 0x1de   :  { %v876_v62 = vpop.eup %875 }
 0x1df   :  { %v415_v45 = vmul.f32 %v876_v62, %v413_v59  ;;  %vm421_vm9 = vweird.f32 %v876_v62 }
 0x1e0   :  { %vm422_vm11 = vmor %vm420_vm10, %vm421_vm9 }
 0x1e1   :  { %v416_v63 = vmul.f32 %v876_v62, %v415_v45 }
 0x1e3   :  { %v417_v14 = vmul.f32 0.5, %v416_v63 }
 0x1e5   :  { %v418_v2 = vsub.f32 1.5, %v417_v14 }
 0x1e7   :  { %v419_v21 = vmul.f32 %v876_v62, %v418_v2 }
 0x1e9   :  { %v423_v24 = vsel %vm422_vm11, %v876_v62, %v419_v21 }
 0x1ea   :  { %v424_v26 = vmul.f32 %v423_v24, %v56_v20 }
 0x1ec   :  { %429 = vperm.xlu1 %873, %v424_v26   ;;  %v425_v27 = vmul.f32 %v424_v26, %v408_v39 }
 0x1ee   :  { %v426_v1 = vsub.f32 %v57_v28, %v425_v27 }
 0x1f4   :  { %438 = vperm.xlu1 %873, %v426_v1  }
 0x25e   :  { %v430_v31 = vpop.permute.xlu1 %429 }
 0x25f   :  { %v434_v38 = vmul.f32 %v430_v31, %v371_v58  ;;  %v435_v10 = vmul.f32 %v430_v31, %v391_v0  ;;  %v433_v59 = vmul.f32 %v430_v31, %v351_v6  ;;  %v432_v0 = vmul.f32 %v430_v31, %v331_v4 }
 0x266   :  { %v439_v40 = vpop.permute.xlu1 %438 }
 0x267   :  { %v443_v43 = vadd.f32 %v439_v40, %v434_v38  ;;  %v444_v46 = vadd.f32 %v439_v40, %v435_v10  ;;  %v442_v39 = vadd.f32 %v439_v40, %v433_v59  ;;  %v441_v6 = vadd.f32 %v439_v40, %v432_v0 }
 0x269   :  { %v1287_v47 = vmax.f32 %v443_v43, 0.0  ;;  %v1289_v48 = vmax.f32 %v444_v46, 0.0  ;;  %v1297_v58 = vmax.f32 %v442_v39, 0.0  ;;  %v1305_v62 = vmax.f32 %v441_v6, 0.0 }
 0x26b   :  { %611 = vrot.lane.b32.xlu2 %v1289_v48, %s966_s5  ;;  %585 = vrot.lane.b32.xlu0 %v1287_v47, %s968_s9 }
 0x26c   :  { %633 = vrot.lane.b32.xlu1 %v1287_v47, %s967_s6 }
 0x273   :  { %561 = vrot.lane.b32.xlu0 %v1287_v47, %s969_s12  ;;  %631 = vrot.lane.b32.xlu2 %v1297_v58, %s967_s6 }
 0x274   :  { %635 = vrot.lane.b32.xlu1 %v1289_v48, %s967_s6 }
 0x27b   :  { %607 = vrot.lane.b32.xlu0 %v1297_v58, %s966_s5  ;;  %581 = vrot.lane.b32.xlu2 %v1305_v62, %s968_s9 }
 0x27c   :  { %609 = vrot.lane.b32.xlu1 %v1287_v47, %s966_s5 }
 0x283   :  { %523 = vrot.lane.b32.xlu0 %v1297_v58, %s970_s13  ;;  %583 = vrot.lane.b32.xlu2 %v1297_v58, %s968_s9 }
 0x284   :  { %629 = vrot.lane.b32.xlu1 %v1305_v62, %s967_s6 }
 0x28b   :  { %499 = vrot.lane.b32.xlu0 %v1297_v58, %s971_s14  ;;  %559 = vrot.lane.b32.xlu2 %v1297_v58, %s969_s12 }
 0x28c   :  { %587 = vrot.lane.b32.xlu1 %v1289_v48, %s968_s9 }
 0x293   :  { %475 = vrot.lane.b32.xlu0 %v1297_v58, %s972_s15  ;;  %527 = vrot.lane.b32.xlu2 %v1289_v48, %s970_s13 }
 0x294   :  { %605 = vrot.lane.b32.xlu1 %v1305_v62, %s966_s5 }
 0x29b   :  { %521 = vrot.lane.b32.xlu0 %v1305_v62, %s970_s13  ;;  %503 = vrot.lane.b32.xlu2 %v1289_v48, %s971_s14 }
 0x29c   :  { %563 = vrot.lane.b32.xlu1 %v1289_v48, %s969_s12 }
 0x2a3   :  { %479 = vrot.lane.b32.xlu0 %v1289_v48, %s972_s15  ;;  %453 = vrot.lane.b32.xlu2 %v1287_v47, %s973_s16 }
 0x2a4   :  { %557 = vrot.lane.b32.xlu1 %v1305_v62, %s969_s12 }
 0x2ab   :  { %473 = vrot.lane.b32.xlu0 %v1305_v62, %s972_s15  ;;  %455 = vrot.lane.b32.xlu2 %v1289_v48, %s973_s16 }
 0x2ac   :  { %525 = vrot.lane.b32.xlu1 %v1287_v47, %s970_s13 }
 0x2b4   :  { %501 = vrot.lane.b32.xlu1 %v1287_v47, %s971_s14 }
 0x2bc   :  { %477 = vrot.lane.b32.xlu1 %v1287_v47, %s972_s15 }
 0x2c4   :  { %451 = vrot.lane.b32.xlu1 %v1297_v58, %s973_s16 }
 0x2c5   :  { %v612_v4 = vpop.permute.xlu2 %611 }
 0x2cc   :  { %497 = vrot.lane.b32.xlu1 %v1305_v62, %s971_s14 }
 0x2cd   :  { %v632_v45 = vpop.permute.xlu2 %631 }
 0x2d4   :  { %449 = vrot.lane.b32.xlu1 %v1305_v62, %s973_s16 }
 0x2d5   :  { %v582_v63 = vpop.permute.xlu2 %581 }
 0x2dd   :  { %v586_v14 = vpop.permute.xlu0 %585  ;;  %v584_v24 = vpop.permute.xlu2 %583 }
 0x2de   :  { %v634_v2 = vpop.permute.xlu1 %633  ;;  %v590_v40 = vsel %vm207_vm2, %v584_v24, %v586_v14 }
 0x2df   :  { %v638_v20 = vsel %vm257_vm0, %v632_v45, %v634_v2  ;;  %v598_v39 = vmul.f32 %v590_v40, %v1166_v61 }
 0x2e0   :  { %v646_v21 = vmul.f32 %v638_v20, %v1099_v12  ;;  %v550_v20 = vmul.f32 %v1297_v58, %v1183_v13 }
 0x2e2   :  { %719 = vmatpush.msrb.mxu1 %v646_v21 }
 0x2e5   :  { %v562_v26 = vpop.permute.xlu0 %561  ;;  %v560_v38 = vpop.permute.xlu2 %559 }
 0x2e6   :  { %v636_v27 = vpop.permute.xlu1 %635 }
 0x2e7   :  { %v637_v28 = vsel %vm257_vm0, %v634_v2, %v636_v27 }
 0x2e8   :  { %v647_v1 = vmul.f32 %v637_v28, %v1105_v18  ;;  %v566_v18 = vsel %vm182_vm3, %v560_v38, %v562_v26 }
 0x2e9   :  { %v574_v0 = vmul.f32 %v566_v18, %v1173_v5 }
 0x2ea   :  { %739 = vmatpush.msrb.mxu2 %v647_v1 }
 0x2ed   :  { %v608_v31 = vpop.permute.xlu0 %607 }
 0x2ee   :  { %v610_v10 = vpop.permute.xlu1 %609 }
 0x2ef   :  { %v613_v43 = vsel %vm232_vm1, %v610_v10, %v612_v4  ;;  %v614_v12 = vsel %vm232_vm1, %v608_v31, %v610_v10 }
 0x2f0   :  { %v622_v46 = vmul.f32 %v614_v12, %v1148_v50  ;;  %v623_v59 = vmul.f32 %v613_v43, %v1115_v25 }
 0x2f2   :  { %720 = vmatpush.msrb.mxu1 %v622_v46  ;;  %740 = vmatpush.msrb.mxu2 %v623_v59 }
 0x2f4   :  { %721 = vmatpush.msrb.mxu1 %v598_v39 }
 0x2f5   :  { %v524_v6 = vpop.permute.xlu0 %523 }
 0x2f6   :  { %722 = vmatpush.msrb.mxu1 %v574_v0  ;;  %v630_v2 = vpop.permute.xlu1 %629 }
 0x2f7   :  { %v639_v50 = vsel %vm257_vm0, %v630_v2, %v632_v45  ;;  %v640_v25 = vsel %vm257_vm0, %v636_v27, %v630_v2  ;;  %v591_v27 = vsel %vm207_vm2, %v582_v63, %v584_v24 }
 0x2f8   :  { %723 = vmatpush.msrb.mxu1 %v550_v20  ;;  %v645_v21 = vmul.f32 %v639_v50, %v1093_v8  ;;  %v648_v61 = vmul.f32 %v640_v25, %v1107_v19  ;;  %v597_v40 = vmul.f32 %v591_v27, %v1164_v60 }
 0x2fa   :  { %699 = vmatpush.msrb.mxu0 %v645_v21  ;;  %759 = vmatpush.msrb.mxu3 %v648_v61 }
 0x2fd   :  { %v1385_v5 = vpop.permute.xlu0 %499 }
 0x2fe   :  { %v588_v28 = vpop.permute.xlu1 %587 }
 0x2ff   :  { %v589_v1 = vsel %vm207_vm2, %v586_v14, %v588_v28  ;;  %v592_v8 = vsel %vm207_vm2, %v588_v28, %v582_v63  ;;  %v528_v63 = vpop.permute.xlu2 %527  ;;  %v55_v28 = vld [vmem:[#allocation6 + $0x8] sm:$0xff] }
 0x300   :  { %v599_v13 = vmul.f32 %v589_v1, %v1121_v29  ;;  %v600_v43 = vmul.f32 %v592_v8, %v1131_v36  ;;  %v551_v36 = vmul.f32 %v1287_v47, %v1139_v42  ;;  %v549_v42 = vmul.f32 %v1305_v62, %v1181_v11 }
 0x301   :  { %v552_v47 = vmul.f32 %v1289_v48, %v1154_v55 }
 0x302   :  { %741 = vmatpush.msrb.mxu2 %v599_v13 }
 0x305   :  { %v1390_v58 = vpop.permute.xlu0 %475 }
 0x306   :  { %v606_v45 = vpop.permute.xlu1 %605 }
 0x307   :  { %v615_v19 = vsel %vm232_vm1, %v606_v45, %v608_v31  ;;  %v616_v10 = vsel %vm232_vm1, %v612_v4, %v606_v45  ;;  %v504_v18 = vpop.permute.xlu2 %503 }
 0x308   :  { %v621_v14 = vmul.f32 %v615_v19, %v1146_v49  ;;  %v624_v29 = vmul.f32 %v616_v10, %v1123_v30 }
 0x30a   :  { %700 = vmatpush.msrb.mxu0 %v621_v14  ;;  %760 = vmatpush.msrb.mxu3 %v624_v29 }
 0x30c   :  { %701 = vmatpush.msrb.mxu0 %v597_v40  ;;  %761 = vmatpush.msrb.mxu3 %v600_v43 }
 0x30d   :  { %v522_v24 = vpop.permute.xlu0 %521 }
 0x30e   :  { %v531_v31 = vsel %vm145_vm4, %v522_v24, %v524_v6  ;;  %v564_v12 = vpop.permute.xlu1 %563 }
 0x30f   :  { %v565_v4 = vsel %vm182_vm3, %v562_v26, %v564_v12  ;;  %v538_v49 = vmul.f32 %v531_v31, %v1224_v54  ;;  %v454_v11 = vpop.permute.xlu2 %453 }
 0x310   :  { %v575_v30 = vmul.f32 %v565_v4, %v1137_v41  ;;  %v532_v41 = vsel %vm145_vm4, %v528_v63, %v522_v24 }
 0x311   :  { %724 = vmatpush.msrb.mxu1 %v538_v49 }
 0x312   :  { %742 = vmatpush.msrb.mxu2 %v575_v30 }
 0x314   :  { %743 = vmatpush.msrb.mxu2 %v551_v36 }
 0x316   :  { %v558_v60 = vpop.permute.xlu1 %557 }
 0x317   :  { %v567_v46 = vsel %vm182_vm3, %v558_v60, %v560_v38  ;;  %v568_v59 = vsel %vm182_vm3, %v564_v12, %v558_v60  ;;  %v537_v38 = vmul.f32 %v532_v41, %v1222_v53 }
 0x318   :  { %v573_v26 = vmul.f32 %v567_v46, %v1177_v9  ;;  %v576_v54 = vmul.f32 %v568_v59, %v1150_v51 }
 0x31a   :  { %702 = vmatpush.msrb.mxu0 %v573_v26  ;;  %762 = vmatpush.msrb.mxu3 %v576_v54 }
 0x31c   :  { %703 = vmatpush.msrb.mxu0 %v549_v42  ;;  %763 = vmatpush.msrb.mxu3 %v552_v47 }
 0x31e   :  { %v526_v39 = vpop.permute.xlu1 %525  ;;  %704 = vmatpush.msrb.mxu0 %v537_v38 }
 0x31f   :  { %v529_v51 = vsel %vm145_vm4, %v526_v39, %v528_v63  ;;  %v530_v9 = vsel %vm145_vm4, %v524_v6, %v526_v39  ;;  %v480_v6 = vpop.permute.xlu0 %479 }
 0x320   :  { %v539_v0 = vmul.f32 %v530_v9, %v1194_v22  ;;  %v540_v2 = vmul.f32 %v529_v51, %v1196_v23  ;;  %v456_v22 = vpop.permute.xlu2 %455 }
 0x321   :  { %v457_v50 = vsel %vm70_vm7, %v454_v11, %v456_v22 }
 0x322   :  { %744 = vmatpush.msrb.mxu2 %v539_v0  ;;  %764 = vmatpush.msrb.mxu3 %v540_v2  ;;  %v58_v0 = vld [vmem:[%s1497_s3 + $0x10] sm:$0xff] }
 0x326   :  { %v502_v55 = vpop.permute.xlu1 %501 }
 0x327   :  { %v505_v48 = vsel %vm120_vm5, %v502_v55, %v504_v18  ;;  %v506_v53 = vsel %vm120_vm5, %v1385_v5, %v502_v55 }
 0x328   :  { %v515_v62 = vmul.f32 %v506_v53, %v1205_v33  ;;  %v516_v20 = vmul.f32 %v505_v48, %v1207_v34  ;;  %v468_v34 = vmul.f32 %v457_v50, %v1255_v37  ;;  %v59_v53 = vld [vmem:[%s1497_s3 + $0x18] sm:$0xff] }
 0x32a   :  { %745 = vmatpush.msrb.mxu2 %v515_v62  ;;  %765 = vmatpush.msrb.mxu3 %v516_v20 }
 0x32e   :  { %v478_v23 = vpop.permute.xlu1 %477 }
 0x32f   :  { %v481_v25 = vsel %vm95_vm6, %v478_v23, %v480_v6  ;;  %v482_v21 = vsel %vm95_vm6, %v1390_v58, %v478_v23 }
 0x330   :  { %v491_v61 = vmul.f32 %v482_v21, %v1216_v44  ;;  %v492_v33 = vmul.f32 %v481_v25, %v1242_v17  ;;  %v474_v44 = vpop.permute.xlu0 %473 }
 0x331   :  { %v483_v17 = vsel %vm95_vm6, %v474_v44, %v1390_v58  ;;  %v484_v37 = vsel %vm95_vm6, %v480_v6, %v474_v44 }
 0x332   :  { %746 = vmatpush.msrb.mxu2 %v491_v61  ;;  %766 = vmatpush.msrb.mxu3 %v492_v33  ;;  %v489_v14 = vmul.f32 %v484_v37, %v1258_v35  ;;  %v490_v58 = vmul.f32 %v483_v17, %v1260_v32 }
 0x334   :  { %767 = vmatpush.msrb.mxu3 %v468_v34 }
 0x335   :  { %856 = vmatmul.msk.f32.vlgmr.msrb.gmra.mxu3 %vm310_vm8, %v55_v28 }
 0x336   :  { %v452_v1 = vpop.permute.xlu1 %451 }
 0x337   :  { %v458_v13 = vsel %vm70_vm7, %v452_v1, %v454_v11 }
 0x338   :  { %v467_v45 = vmul.f32 %v458_v13, %v1226_v56 }
 0x33a   :  { %747 = vmatpush.msrb.mxu2 %v467_v45  ;;  %v880_v45 = vld [vmem:[%s1494_s0 + $0x10] sm:$0xff] }
 0x33b   :  { %855 = vmatmul.msk.f32.vlgmr.msrb.gmra.mxu2 %vm310_vm8, %v55_v28 }
 0x33e   :  { %v498_v27 = vpop.permute.xlu1 %497 }
 0x33f   :  { %v507_v8 = vsel %vm120_vm5, %v498_v27, %v1385_v5  ;;  %v508_v19 = vsel %vm120_vm5, %v504_v18, %v498_v27  ;;  %v881_v27 = vld [vmem:[%s1494_s0 + $0x18] sm:$0xff] }
 0x340   :  { %v513_v56 = vmul.f32 %v508_v19, %v1238_v15  ;;  %v514_v10 = vmul.f32 %v507_v8, %v1240_v16 }
 0x342   :  { %705 = vmatpush.msrb.mxu0 %v513_v56  ;;  %725 = vmatpush.msrb.mxu1 %v514_v10 }
 0x344   :  { %706 = vmatpush.msrb.mxu0 %v489_v14  ;;  %726 = vmatpush.msrb.mxu1 %v490_v58 }
 0x346   :  { %v450_v29 = vpop.permute.xlu1 %449 }
 0x347   :  { %v459_v40 = vsel %vm70_vm7, %v450_v29, %v452_v1  ;;  %v460_v5 = vsel %vm70_vm7, %v456_v22, %v450_v29 }
 0x348   :  { %v465_v43 = vmul.f32 %v460_v5, %v1271_v52  ;;  %v466_v15 = vmul.f32 %v459_v40, %v1273_v57 }
 0x34a   :  { %707 = vmatpush.msrb.mxu0 %v465_v43  ;;  %727 = vmatpush.msrb.mxu1 %v466_v15 }
 0x34b   :  { %853 = vmatmul.msk.f32.vlgmr.msrb.gmra.mxu0 %vm310_vm8, %v55_v28  ;;  %854 = vmatmul.msk.f32.vlgmr.msrb.gmra.mxu1 %vm310_vm8, %v55_v28  ;;  %v879_v28 = vld [vmem:[%s1494_s0] sm:$0xff] }
 0x3b8   :  { %v769_v35 = vpop.f32.mrf.mxu3 }
 0x3b9   :  { %v775_v30 = vmul.f32 %v769_v35, %v769_v35 }
 0x3be   :  { %v749_v16 = vpop.f32.mrf.mxu2 }
 0x3bf   :  { %v774_v4 = vmul.f32 %v749_v16, %v749_v16 }
 0x3c8   :  { %v709_v32 = vpop.f32.mrf.mxu0  ;;  %v729_v24 = vpop.f32.mrf.mxu1 }
 0x3c9   :  { %v772_v63 = vmul.f32 %v709_v32, %v709_v32  ;;  %v773_v31 = vmul.f32 %v729_v24, %v729_v24  ;;  %v776_v12 = vadd.f32 %v729_v24, %v709_v32 }
 0x3cb   :  { %v781_v7 = vadd.f32 %v773_v31, %v772_v63  ;;  %v777_v49 = vadd.f32 %v776_v12, %v749_v16 }
 0x3cd   :  { %v778_v52 = vadd.f32 %v777_v49, %v769_v35  ;;  %v782_v36 = vadd.f32 %v781_v7, %v774_v4 }
 0x3cf   :  { %779 = vadd.xlane.f32.xlu2 %v778_v52  ;;  %v783_v57 = vadd.f32 %v782_v36, %v775_v30 }
 0x3d1   :  { %784 = vadd.xlane.f32.xlu0 %v783_v57 }
 0x442   :  { %v780_v60 = vpop.xlane.xlu2 %779 }
 0x443   :  { %v786_v46 = vmul.f32 0.001953125, %v780_v60 }
 0x444   :  { %v785_v59 = vpop.xlane.xlu0 %784 }
 0x445   :  { %v788_v18 = vmul.f32 %v786_v46, %v786_v46  ;;  %v787_v26 = vmul.f32 0.001953125, %v785_v59 }
 0x447   :  { %v789_v54 = vsub.f32 %v787_v26, %v788_v18 }
 0x449   :  { %v790_v41 = vmax.f32 %v789_v54, 0.0 }
 0x44b   :  { %v791_v42 = vadd.f32 1e-05, %v790_v41 }
 0x44d   :  { %877 = vrsqrt.f32 %v791_v42  ;;  %vm798_vm13 = vweird.f32 %v791_v42 }
 0x453   :  { %v878_v47 = vpop.eup %877 }
 0x454   :  { %v793_v38 = vmul.f32 %v878_v47, %v791_v42  ;;  %vm799_vm12 = vweird.f32 %v878_v47 }
 0x455   :  { %vm800_vm14 = vmor %vm798_vm13, %vm799_vm12 }
 0x456   :  { %v794_v39 = vmul.f32 %v878_v47, %v793_v38 }
 0x458   :  { %v795_v51 = vmul.f32 0.5, %v794_v39 }
 0x45a   :  { %v796_v9 = vsub.f32 1.5, %v795_v51 }
 0x45c   :  { %v797_v2 = vmul.f32 %v878_v47, %v796_v9 }
 0x45e   :  { %v801_v11 = vsel %vm800_vm14, %v878_v47, %v797_v2 }
 0x45f   :  { %v802_v55 = vmul.f32 %v801_v11, %v58_v0 }
 0x461   :  { %807 = vperm.xlu1 %873, %v802_v55   ;;  %v803_v48 = vmul.f32 %v802_v55, %v786_v46 }
 0x463   :  { %v804_v62 = vsub.f32 %v59_v53, %v803_v48 }
 0x469   :  { %816 = vperm.xlu1 %873, %v804_v62  }
 0x4d3   :  { %v808_v20 = vpop.permute.xlu1 %807 }
 0x4d4   :  { %v810_v22 = vmul.f32 %v808_v20, %v709_v32  ;;  %v811_v6 = vmul.f32 %v808_v20, %v729_v24  ;;  %v812_v23 = vmul.f32 %v808_v20, %v749_v16  ;;  %v813_v50 = vmul.f32 %v808_v20, %v769_v35 }
 0x4db   :  { %v817_v25 = vpop.permute.xlu1 %816 }
 0x4dc   :  { %v819_v21 = vadd.f32 %v817_v25, %v810_v22  ;;  %v820_v61 = vadd.f32 %v817_v25, %v811_v6  ;;  %v821_v33 = vadd.f32 %v817_v25, %v812_v23  ;;  %v822_v34 = vadd.f32 %v817_v25, %v813_v50 }
 0x4de   :  { %v823_v1 = vadd.f32 %v879_v28, %v819_v21  ;;  %v824_v13 = vadd.f32 %v820_v61, %v1037_v3  ;;  %v825_v44 = vadd.f32 %v880_v45, %v821_v33  ;;  %v826_v17 = vadd.f32 %v881_v27, %v822_v34 }
 0x4e0   :  { %827 = vst [vmem:[#allocation8] sm:$0xff] %v823_v1 }
 0x4e1   :  { %828 = vst [vmem:[#allocation8 + $0x8] sm:$0xff] %v824_v13 }
 0x4e2   :  { %829 = vst [vmem:[#allocation8 + $0x10] sm:$0xff] %v825_v44 }
 0x4e3   :  { %830 = vst [vmem:[#allocation8 + $0x18] sm:$0xff] %v826_v17 }
 0x4e4   :  { %841 = dma.vmem_to_hbm [thread:$0]  %s837_s1, 512, %s839_s30, [#allocation5]  }
 0x4e5   :  { %958 = dma.done.wait [#allocation5], 512  }
 0x4e6   :  { %959 = vsyncadd [#allocation5], 4294966784 }
 0x4e7   :  { %846 = vsyncpa [#allocation4], 1 }
 0x4e8   :  { %847 = vsyncpa [#allocation7], 1 }
 0x4e9   :  { %848 = vsyncpa [#allocation5], 1 }

</bundles_post_ra>
